<compile_context>
chip_gen: v7x
topology: tpu7x:2x2x1
jax: 0.10.0
libtpu: 0.0.40
codegen_flags: <defaults>
</compile_context>

<pallas_src>
import functools

import jax
import jax.numpy as jnp
from jax.experimental import pallas as pl
from jax.experimental.pallas import tpu as pltpu


# ---------------------------------------------------------------------------
# device / helpers
# ---------------------------------------------------------------------------

@functools.lru_cache(maxsize=1)
def _tpu_info():
    """(vmem_capacity_bytes, multi_core) — device-aware caps and path choice."""
    vmem_cap = 128 * 1024 * 1024
    kind = ""
    try:
        vmem_cap = int(pltpu.get_tpu_info().vmem_capacity_bytes)
    except Exception:
        pass
    try:
        kind = jax.devices()[0].device_kind.lower()
    except Exception:
        pass
    multi_core = "v7" in kind     # v7x: 2 TensorCores/chip, 64 MiB VMEM each
    return vmem_cap, multi_core


def _vmem_limit(nbytes, vmem_cap):
    """Scoped-VMEM request: what we need + slack, capped below physical VMEM."""
    ceiling = max(int(vmem_cap * 0.72), 24 << 20)   # ~46 MiB v7x, ~92 MiB v5e/v6e
    want = max(int(nbytes) + (8 << 20), 32 << 20)
    return int(min(want, ceiling))


def _pick_tile(hw, max_tile=2048):
    """Spatial (lane) tile: full plane if it fits; else the largest divisor of
    hw that is a multiple of 128 and <= max_tile; else a 1024-lane non-divisor
    tile (grid is cdiv-sized, tail contributions are masked in-kernel)."""
    if hw <= max_tile:
        return hw
    top = max_tile - (max_tile % 128)
    for cand in range(top, 127, -128):
        if hw % cand == 0:
            return cand
    return min(top, 1024)


def _const_spec(block_shape, index_map):
    """Grid-invariant operand: single-buffered (reclaims the second pipeline
    buffer's VMEM — matters most on v7x's 64 MiB budget)."""
    try:
        return pl.BlockSpec(block_shape, index_map, pipeline_mode=pl.Buffered(1))
    except Exception:
        return pl.BlockSpec(block_shape, index_map)


def _match_spatial(xs):
    """Nearest-neighbour upsample (== F.interpolate 'nearest') to max H, W."""
    # TODO(synk): the smaller pyramid levels are still materialized at full
    # resolution by XLA gathers before the kernel (one extra HBM write+read per
    # upsampled level).  Moving the replication into the kernel needs an
    # Element/scalar-prefetch row-gather index_map plus lane-axis replication
    # (non-rectangular access); left as XLA glue for robustness.
    max_h = max(t.shape[-2] for t in xs)
    max_w = max(t.shape[-1] for t in xs)
    out = []
    for t in xs:
        h, w = t.shape[-2], t.shape[-1]
        if h != max_h or w != max_w:
            hi = (jnp.arange(max_h) * h // max_h).astype(jnp.int32)
            wi = (jnp.arange(max_w) * w // max_w).astype(jnp.int32)
            t = jnp.take(jnp.take(t, hi, axis=3), wi, axis=4)
        out.append(t)
    return out, max_h, max_w


def _build_w_t(w_r, w_i, w_j, w_k, dtype):
    """Transposed Hamilton-product weight matrix in interleaved channel order.

    W_t[c_out*4 + q_out, c_in*4 + q_in] so that y^T = W_t @ x^T where x^T rows
    follow the native [C, 4] flattening of the PyTorch layout.
    """
    blocks = [
        [ w_r,  w_i,  w_j,  w_k],
        [-w_i,  w_r, -w_k,  w_j],
        [-w_j,  w_k,  w_r, -w_i],
        [-w_k, -w_j,  w_i,  w_r],
    ]
    wb = jnp.stack([jnp.stack(r, axis=0) for r in blocks], axis=0)  # (qi,qo,ci,co)
    cin_q, cout_q = w_r.shape
    w_t = jnp.transpose(wb, (3, 1, 2, 0))                           # (co,qo,ci,qi)
    return w_t.reshape(cout_q * 4, cin_q * 4).astype(dtype)


# ---------------------------------------------------------------------------
# kernels
# ---------------------------------------------------------------------------

def _conv_tile(x_refs, w_refs):
    """y^T tile = sum_i W_i^T @ x_i^T, f32 accumulate on the MXU."""
    y = jnp.dot(w_refs[0][...], x_refs[0][...], preferred_element_type=jnp.float32)
    for xr, wr in zip(x_refs[1:], w_refs[1:]):
        y = y + jnp.dot(wr[...], xr[...], preferred_element_type=jnp.float32)
    return y


def _make_fused_kernel(num_inputs, inv_n, eps, hw, tile_m):
    """Single-call path: phase 0 = conv + stats (y kept in VMEM), phase 1 =
    BN + ReLU from the VMEM-resident y."""
    needs_mask = (hw % tile_m) != 0

    def kernel(*refs):
        gb_ref = refs[0]
        x_refs = refs[1:1 + num_inputs]
        w_refs = refs[1 + num_inputs:1 + 2 * num_inputs]
        o_ref = refs[1 + 2 * num_inputs]
        y_scr, sum_scr, ssq_scr, scale_scr, shift_scr = refs[2 + 2 * num_inputs:]

        p = pl.program_id(0)
        b = pl.program_id(1)
        sp = pl.program_id(2)
        n_sp = pl.num_programs(2)
        tile = b * n_sp + sp

        @pl.when(p == 0)
        def _conv_and_stats():
            @pl.when(tile == 0)
            def _init():
                sum_scr[...] = jnp.zeros_like(sum_scr)
                ssq_scr[...] = jnp.zeros_like(ssq_scr)
                # Phase 0 keeps the output block pinned at (0,0,0) and never
                # writes it; zero it once so a writeback can never flush
                # uninitialized VMEM (phase 1 overwrites it with real data).
                o_ref[...] = jnp.zeros_like(o_ref)

            y = _conv_tile(x_refs, w_refs)
            y_scr[tile] = y
            if needs_mask:
                lane = jax.lax.broadcasted_iota(jnp.int32, y.shape, 1)
                y = jnp.where(lane < (hw - sp * tile_m), y, 0.0)
            sum_scr[...] += jnp.sum(y, axis=1, keepdims=True)
            ssq_scr[...] += jnp.sum(y * y, axis=1, keepdims=True)

        @pl.when(p == 1)
        def _normalize():
            @pl.when(tile == 0)
            def _finalize_stats():
                mean = sum_scr[...] * inv_n
                var = jnp.maximum(ssq_scr[...] * inv_n - mean * mean, 0.0)
                inv_std = jax.lax.rsqrt(var + eps)
                g = gb_ref[:, 0:1]
                bta = gb_ref[:, 1:2]
                scale_scr[...] = g * inv_std
                shift_scr[...] = bta - mean * g * inv_std

            y = y_scr[tile]
            o_ref[...] = jnp.maximum(
                y * scale_scr[...] + shift_scr[...], 0.0).astype(o_ref.dtype)

    return kernel


def _make_stats_kernel(num_inputs, hw, tile_m):
    """Recompute path, call 1: conv + per-batch partial sum/sumsq (no y store)."""
    needs_mask = (hw % tile_m) != 0

    def kernel(*refs):
        x_refs = refs[:num_inputs]
        w_refs = refs[num_inputs:2 * num_inputs]
        stats_ref = refs[2 * num_inputs]
        sp = pl.program_id(1)

        @pl.when(sp == 0)
        def _init():
            stats_ref[...] = jnp.zeros_like(stats_ref)

        y = _conv_tile(x_refs, w_refs)
        if needs_mask:
            lane = jax.lax.broadcasted_iota(jnp.int32, y.shape, 1)
            y = jnp.where(lane < (hw - sp * tile_m), y, 0.0)
        stats_ref[:, 0:1] += jnp.sum(y, axis=1, keepdims=True)
        stats_ref[:, 1:2] += jnp.sum(y * y, axis=1, keepdims=True)

    return kernel


def _make_apply_kernel(num_inputs):
    """Recompute path, call 2: conv recomputed + scale/shift + ReLU, lane-dense
    store.  Fully 'parallel' grid (uses both v7x TensorCores)."""

    def kernel(*refs):
        ss_ref = refs[0]
        x_refs = refs[1:1 + num_inputs]
        w_refs = refs[1 + num_inputs:1 + 2 * num_inputs]
        o_ref = refs[1 + 2 * num_inputs]

        y = _conv_tile(x_refs, w_refs)
        o_ref[...] = jnp.maximum(
            y * ss_ref[:, 0:1] + ss_ref[:, 1:2], 0.0).astype(o_ref.dtype)

    return kernel


# ---------------------------------------------------------------------------
# wrapper
# ---------------------------------------------------------------------------

def quaternion_concat(xs, w_r, w_i, w_j, w_k, gamma, beta, target_channels,
                      eps=1e-5, tile_m_max=2048, max_fused_vmem_bytes=None,
                      force_path=None):
    """JAX/Pallas equivalent of QuaternionConcat.forward (reduce=True).

    gamma/beta are per real output channel in PyTorch's interleaved (C, 4)
    order (flattened as c*4 + q).  `force_path` in {None, "fused", "split"}.
    """
    if not isinstance(xs, (list, tuple)):
        xs = [xs]
    for i, t in enumerate(xs):
        if t.ndim != 5:
            raise ValueError(
                f"Tensor {i} has shape {t.shape}. Expected 5 dims [B, C, 4, H, W].")
        if t.shape[2] != 4:
            raise ValueError(
                f"Tensor {i} has quaternion dimension {t.shape[2]}, expected 4.")
    if target_channels % 4 != 0:
        raise ValueError("target_channels must be a multiple of 4.")

    vmem_cap, multi_core = _tpu_info()

    xs, H, W = _match_spatial(list(xs))
    B = xs[0].shape[0]
    HW = H * W
    cout4 = target_channels
    coutq = target_channels // 4

    compute_dtype = jnp.result_type(*(t.dtype for t in xs))
    out_dtype = compute_dtype

    # Copy-free reshape: [B, C_i, 4, H, W] -> (B, 4*C_i, H*W); channel axis is
    # interleaved (c, q), matching the W_t column order below.
    x_arrs = [t.astype(compute_dtype).reshape(B, t.shape[1] * 4, HW) for t in xs]
    ci4s = [a.shape[1] for a in x_arrs]
    cin4 = sum(ci4s)
    num_inputs = len(x_arrs)

    w_t = _build_w_t(w_r, w_i, w_j, w_k, compute_dtype)            # (Cout4, Cin4)
    if w_t.shape != (cout4, cin4):
        raise ValueError(f"Weight shape {w_t.shape} does not match "
                         f"(target_channels={cout4}, 4*sum(C_i)={cin4}).")
    w_arrs = []
    off = 0
    for c in ci4s:
        w_arrs.append(w_t[:, off:off + c])
        off += c

    gamma_f = jnp.asarray(gamma, jnp.float32).reshape(-1)
    beta_f = jnp.asarray(beta, jnp.float32).reshape(-1)

    tile_m = _pick_tile(HW, tile_m_max)
    n_sp = -(-HW // tile_m)                                        # cdiv
    inv_n = 1.0 / float(B * HW)
    itemsize = jnp.dtype(compute_dtype).itemsize
    out_itemsize = jnp.dtype(out_dtype).itemsize

    x_tile_bytes = 2 * sum(c * tile_m for c in ci4s) * itemsize    # double-buffered
    w_bytes = cout4 * cin4 * itemsize                              # single-buffered
    out_tile_bytes = 2 * cout4 * tile_m * out_itemsize
    small_bytes = 16 * cout4 * 4
    y_bytes = B * n_sp * cout4 * tile_m * 4
    split_need = x_tile_bytes + w_bytes + out_tile_bytes + small_bytes
    fused_need = y_bytes + split_need

    if max_fused_vmem_bytes is None:
        max_fused_vmem_bytes = ((18 << 20) if multi_core
                                else min(int(vmem_cap * 0.6), 80 << 20))

    if force_path == "fused":
        use_fused = True
    elif force_path == "split":
        use_fused = False
    else:
        # On v7x (2 TCs) prefer the fully-parallel recompute path; on v5e/v6e
        # prefer the fused path whenever y fits the (device-aware) VMEM budget.
        use_fused = (not multi_core) and (fused_need <= max_fused_vmem_bytes)

    if use_fused:
        # --- single fused call: y never touches HBM, x read once ------------
        x_specs = [pl.BlockSpec((None, c, tile_m),
                                lambda p, b, sp: (b * (1 - p), 0, sp * (1 - p)))
                   for c in ci4s]
        w_specs = [_const_spec((cout4, c), lambda p, b, sp: (0, 0)) for c in ci4s]
        gb_spec = _const_spec((cout4, 2), lambda p, b, sp: (0, 0))
        out_spec = pl.BlockSpec((None, cout4, tile_m),
                                lambda p, b, sp: (b * p, 0, sp * p))
        gb = jnp.stack([gamma_f, beta_f], axis=1)                  # (Cout4, 2)

        out3d = pl.pallas_call(
            _make_fused_kernel(num_inputs, inv_n, eps, HW, tile_m),
            out_shape=jax.ShapeDtypeStruct((B, cout4, HW), out_dtype),
            grid_spec=pltpu.PrefetchScalarGridSpec(
                num_scalar_prefetch=0,
                grid=(2, B, n_sp),
                in_specs=[gb_spec] + x_specs + w_specs,
                out_specs=out_spec,
                scratch_shapes=[
                    pltpu.VMEM((B * n_sp, cout4, tile_m), jnp.float32),  # y
                    pltpu.VMEM((cout4, 1), jnp.float32),                 # sum
                    pltpu.VMEM((cout4, 1), jnp.float32),                 # sumsq
                    pltpu.VMEM((cout4, 1), jnp.float32),                 # scale
                    pltpu.VMEM((cout4, 1), jnp.float32),                 # shift
                ]),
            compiler_params=pltpu.CompilerParams(
                dimension_semantics=("arbitrary", "arbitrary", "arbitrary"),
                vmem_limit_bytes=_vmem_limit(fused_need, vmem_cap)),
        )(gb, *x_arrs, *w_arrs)
    else:
        # --- recompute path: two fully-parallel calls, no y HBM traffic -----
        x_specs = [pl.BlockSpec((None, c, tile_m), lambda b, sp: (b, 0, sp))
                   for c in ci4s]
        w_specs = [_const_spec((cout4, c), lambda b, sp: (0, 0)) for c in ci4s]

        stats = pl.pallas_call(
            _make_stats_kernel(num_inputs, HW, tile_m),
            out_shape=jax.ShapeDtypeStruct((B, cout4, 2), jnp.float32),
            grid_spec=pltpu.PrefetchScalarGridSpec(
                num_scalar_prefetch=0,
                grid=(B, n_sp),
                in_specs=x_specs + w_specs,
                out_specs=pl.BlockSpec((None, cout4, 2),
                                       lambda b, sp: (b, 0, 0))),
            compiler_params=pltpu.CompilerParams(
                dimension_semantics=("parallel", "arbitrary"),
                vmem_limit_bytes=_vmem_limit(split_need, vmem_cap)),
        )(*x_arrs, *w_arrs)

        # Tiny finalize in XLA: reduce per-batch partials, fold gamma/beta.
        sums = jnp.sum(stats[:, :, 0], axis=0)
        ssqs = jnp.sum(stats[:, :, 1], axis=0)
        mean = sums * inv_n
        var = jnp.maximum(ssqs * inv_n - mean * mean, 0.0)
        inv_std = jax.lax.rsqrt(var + eps)
        scale = gamma_f * inv_std
        shift = beta_f - mean * scale
        ss = jnp.stack([scale, shift], axis=1)                     # (Cout4, 2)

        ss_spec = _const_spec((cout4, 2), lambda b, sp: (0, 0))
        out3d = pl.pallas_call(
            _make_apply_kernel(num_inputs),
            out_shape=jax.ShapeDtypeStruct((B, cout4, HW), out_dtype),
            grid_spec=pltpu.PrefetchScalarGridSpec(
                num_scalar_prefetch=0,
                grid=(B, n_sp),
                in_specs=[ss_spec] + x_specs + w_specs,
                out_specs=pl.BlockSpec((None, cout4, tile_m),
                                       lambda b, sp: (b, 0, sp))),
            compiler_params=pltpu.CompilerParams(
                dimension_semantics=("parallel", "parallel"),
                vmem_limit_bytes=_vmem_limit(split_need, vmem_cap)),
        )(ss, *x_arrs, *w_arrs)

    # Free reshape: (B, Cout4, H*W) -> [B, Coutq, 4, H, W] (channels already
    # interleaved (c, q), spatial already row-major).
    return out3d.reshape(B, coutq, 4, H, W)


# ---------------------------------------------------------------------------
# pure-JAX reference (validation only)
# ---------------------------------------------------------------------------

def _reference(xs, w_r, w_i, w_j, w_k, gamma, beta, target_channels, eps=1e-5):
    if not isinstance(xs, (list, tuple)):
        xs = [xs]
    xs, _, _ = _match_spatial(list(xs))
    x = jnp.concatenate(xs, axis=1).astype(jnp.float32)      # (B, Ctot, 4, H, W)
    blocks = [
        [ w_r,  w_i,  w_j,  w_k],
        [-w_i,  w_r, -w_k,  w_j],
        [-w_j,  w_k,  w_r, -w_i],
        [-w_k, -w_j,  w_i,  w_r],
    ]
    wb = jnp.stack([jnp.stack(r, axis=0) for r in blocks],
                   axis=0).astype(jnp.float32)               # (qi, qo, ci, co)
    y = jnp.einsum('bcqhw,qpcd->bdphw', x, wb)               # (B, Coutq, 4, H, W)
    mean = y.mean(axis=(0, 3, 4), keepdims=True)
    var = ((y - mean) ** 2).mean(axis=(0, 3, 4), keepdims=True)
    g = jnp.asarray(gamma, jnp.float32).reshape(1, target_channels // 4, 4, 1, 1)
    b_ = jnp.asarray(beta, jnp.float32).reshape(1, target_channels // 4, 4, 1, 1)
    yn = (y - mean) * jax.lax.rsqrt(var + eps) * g + b_
    return jnp.maximum(yn, 0.0)


# ---------------------------------------------------------------------------
# demo
# ---------------------------------------------------------------------------

if __name__ == "__main__":
    key = jax.random.PRNGKey(0)
    k1, k2, k3, k4, kr, ki, kj, kk = jax.random.split(key, 8)

    # --- Case 1: pyramid concat (8x8 upsampled to 16x16), f32, both paths ---
    B = 2
    target_channels = 16                   # Coutq = 4 quaternion output channels
    x1 = jax.random.normal(k1, (B, 4, 4, 16, 16), dtype=jnp.float32)
    x2 = jax.random.normal(k2, (B, 8, 4, 8, 8), dtype=jnp.float32)
    ctot = x1.shape[1] + x2.shape[1]       # 12
    coutq = target_channels // 4           # 4

    w_r = 0.1 * jax.random.normal(kr, (ctot, coutq), dtype=jnp.float32)
    w_i = 0.1 * jax.random.normal(ki, (ctot, coutq), dtype=jnp.float32)
    w_j = 0.1 * jax.random.normal(kj, (ctot, coutq), dtype=jnp.float32)
    w_k = 0.1 * jax.random.normal(kk, (ctot, coutq), dtype=jnp.float32)
    gamma = jnp.ones((target_channels,), dtype=jnp.float32)
    beta = jnp.zeros((target_channels,), dtype=jnp.float32)

    args = ([x1, x2], w_r, w_i, w_j, w_k, gamma, beta, target_channels)
    ref = jax.block_until_ready(_reference(*args))

    out_fused = jax.block_until_ready(quaternion_concat(*args, force_path="fused"))
    out_split = jax.block_until_ready(quaternion_concat(*args, force_path="split"))
    assert out_fused.shape == (B, coutq, 4, 16, 16), out_fused.shape
    assert out_split.shape == out_fused.shape
    assert bool(jnp.isfinite(out_fused).all()) and bool(jnp.isfinite(out_split).all())
    assert bool(jnp.all(out_fused >= 0.0))                 # ReLU applied
    err_f = float(jnp.max(jnp.abs(out_fused - ref)))
    err_s = float(jnp.max(jnp.abs(out_split - ref)))
    assert err_f < 1e-3, f"fused path mismatch: {err_f}"
    assert err_s < 1e-3, f"split (recompute) path mismatch: {err_s}"

    # --- Case 2: awkward spatial size (50x50 -> 2500 lanes, non-divisor 1024-
    # lane tiles with masked tail), both paths -------------------------------
    x3 = jax.random.normal(k3, (1, 4, 4, 50, 50), dtype=jnp.float32)
    x4 = jax.random.normal(k4, (1, 4, 4, 25, 25), dtype=jnp.float32)
    ctot2 = x3.shape[1] + x4.shape[1]
    w_r2 = 0.1 * jax.random.normal(kr, (ctot2, coutq), dtype=jnp.float32)
    w_i2 = 0.1 * jax.random.normal(ki, (ctot2, coutq), dtype=jnp.float32)
    w_j2 = 0.1 * jax.random.normal(kj, (ctot2, coutq), dtype=jnp.float32)
    w_k2 = 0.1 * jax.random.normal(kk, (ctot2, coutq), dtype=jnp.float32)
    args2 = ([x3, x4], w_r2, w_i2, w_j2, w_k2, gamma, beta, target_channels)
    ref2 = jax.block_until_ready(_reference(*args2))
    out2_f = jax.block_until_ready(quaternion_concat(*args2, force_path="fused"))
    out2_s = jax.block_until_ready(quaternion_concat(*args2, force_path="split"))
    assert out2_f.shape == (1, coutq, 4, 50, 50), out2_f.shape
    err2_f = float(jnp.max(jnp.abs(out2_f - ref2)))
    err2_s = float(jnp.max(jnp.abs(out2_s - ref2)))
    assert err2_f < 1e-3, f"masked-tail fused mismatch: {err2_f}"
    assert err2_s < 1e-3, f"masked-tail split mismatch: {err2_s}"

    # --- Case 3: bf16 activations/output (halved HBM traffic) ---------------
    args_bf = ([x1.astype(jnp.bfloat16), x2.astype(jnp.bfloat16)],
               w_r, w_i, w_j, w_k, gamma, beta, target_channels)
    out_bf = jax.block_until_ready(quaternion_concat(*args_bf))    # auto path
    ref_bf = jax.block_until_ready(_reference(*args_bf))
    assert out_bf.dtype == jnp.bfloat16
    err_bf = float(jnp.max(jnp.abs(out_bf.astype(jnp.float32) - ref_bf)))
    assert err_bf < 2e-1, f"bf16 path mismatch: {err_bf}"

    print("KERNEL_OK")
</pallas_src>

<mosaic_0001>
module attributes {stable_mosaic.version = 11 : i64} {
  func.func @kernel(%arg0: i32, %arg1: i32, %arg2: i32, %arg3: memref<16x2xf32, #tpu.memory_space<vmem>>, %arg4: memref<1x16x256xf32, #tpu.memory_space<vmem>>, %arg5: memref<1x32x256xf32, #tpu.memory_space<vmem>>, %arg6: memref<16x16xf32, #tpu.memory_space<vmem>>, %arg7: memref<16x32xf32, #tpu.memory_space<vmem>>, %arg8: memref<1x16x256xf32, #tpu.memory_space<vmem>>, %arg9: memref<2x16x256xf32, #tpu.memory_space<vmem>>, %arg10: memref<16x1xf32, #tpu.memory_space<vmem>>, %arg11: memref<16x1xf32, #tpu.memory_space<vmem>>, %arg12: memref<16x1xf32, #tpu.memory_space<vmem>>, %arg13: memref<16x1xf32, #tpu.memory_space<vmem>>) attributes {dimension_semantics = [#tpu.dimension_semantics<arbitrary>, #tpu.dimension_semantics<arbitrary>, #tpu.dimension_semantics<arbitrary>], iteration_bounds = array<i64: 2, 2, 1>, scalar_prefetch = 0 : i64, scratch_operands = 5 : i64, tpu.core_type = #tpu.core_type<tc>, window_params = [{pipeline_mode = #tpu.pipeline_mode<synchronous>, transform_indices = @transform_0, window_bounds = array<i64: 16, 2>}, {transform_indices = @transform_1, window_bounds = array<i64: 1, 16, 256>}, {transform_indices = @transform_2, window_bounds = array<i64: 1, 32, 256>}, {pipeline_mode = #tpu.pipeline_mode<synchronous>, transform_indices = @transform_3, window_bounds = array<i64: 16, 16>}, {pipeline_mode = #tpu.pipeline_mode<synchronous>, transform_indices = @transform_4, window_bounds = array<i64: 16, 32>}, {transform_indices = @transform_5, window_bounds = array<i64: 1, 16, 256>}]} {
    %c1_i32 = arith.constant 1 : i32
    %0 = arith.muli %arg1, %c1_i32 : i32
    %1 = arith.addi %0, %arg2 : i32
    %c0_i32 = arith.constant 0 : i32
    %2 = arith.cmpi eq, %arg0, %c0_i32 : i32
    %3 = arith.extui %2 : i1 to i32
    %c0_i32_0 = arith.constant 0 : i32
    %4 = arith.cmpi ne, %3, %c0_i32_0 : i32
    scf.if %4 {
      %c0_i32_3 = arith.constant 0 : i32
      %8 = arith.cmpi eq, %1, %c0_i32_3 : i32
      %9 = arith.extui %8 : i1 to i32
      %c0_i32_4 = arith.constant 0 : i32
      %10 = arith.cmpi ne, %9, %c0_i32_4 : i32
      scf.if %10 {
        %cst_27 = arith.constant 0.000000e+00 : f32
        %35 = vector.broadcast %cst_27 : f32 to vector<16x1xf32>
        %c0_28 = arith.constant 0 : index
        %c0_29 = arith.constant 0 : index
        %36 = vector.load %arg10[%c0_28, %c0_29] : memref<16x1xf32, #tpu.memory_space<vmem>>, vector<16x1xf32>
        tpu.vector_store %arg10[%c0_28, %c0_29], %35 {strides = array<i32>} : memref<16x1xf32, #tpu.memory_space<vmem>>, vector<16x1xf32>,
        %cst_30 = arith.constant 0.000000e+00 : f32
        %37 = vector.broadcast %cst_30 : f32 to vector<16x1xf32>
        %c0_31 = arith.constant 0 : index
        %c0_32 = arith.constant 0 : index
        %38 = vector.load %arg11[%c0_31, %c0_32] : memref<16x1xf32, #tpu.memory_space<vmem>>, vector<16x1xf32>
        tpu.vector_store %arg11[%c0_31, %c0_32], %37 {strides = array<i32>} : memref<16x1xf32, #tpu.memory_space<vmem>>, vector<16x1xf32>,
        %cst_33 = arith.constant 0.000000e+00 : f32
        %39 = vector.broadcast %cst_33 : f32 to vector<16x256xf32>
        %c0_34 = arith.constant 0 : index
        %c0_35 = arith.constant 0 : index
        %c0_36 = arith.constant 0 : index
        %40 = vector.load %arg8[%c0_34, %c0_35, %c0_36] : memref<1x16x256xf32, #tpu.memory_space<vmem>>, vector<1x16x256xf32>
        %41 = vector.shape_cast %40 : vector<1x16x256xf32> to vector<16x256xf32>
        %42 = vector.shape_cast %39 : vector<16x256xf32> to vector<1x16x256xf32>
        tpu.vector_store %arg8[%c0_34, %c0_35, %c0_36], %42 {strides = array<i32>} : memref<1x16x256xf32, #tpu.memory_space<vmem>>, vector<1x16x256xf32>,
      } else {
      }
      %c0 = arith.constant 0 : index
      %c0_5 = arith.constant 0 : index
      %11 = vector.load %arg6[%c0, %c0_5] : memref<16x16xf32, #tpu.memory_space<vmem>>, vector<16x16xf32>
      %c0_6 = arith.constant 0 : index
      %c0_7 = arith.constant 0 : index
      %c0_8 = arith.constant 0 : index
      %12 = vector.load %arg4[%c0_6, %c0_7, %c0_8] : memref<1x16x256xf32, #tpu.memory_space<vmem>>, vector<1x16x256xf32>
      %13 = vector.shape_cast %12 : vector<1x16x256xf32> to vector<16x256xf32>
      %cst = arith.constant dense<0.000000e+00> : vector<16x256xf32>
      %14 = tpu.matmul %11, %13, %cst {dimension_numbers = #tpu.dot_dimension_numbers<[1], [0], [0], [1], [0, 0, 1, 1], [], []>} : vector<16x16xf32>, vector<16x256xf32>, vector<16x256xf32> -> vector<16x256xf32>
      %c0_9 = arith.constant 0 : index
      %c0_10 = arith.constant 0 : index
      %15 = vector.load %arg7[%c0_9, %c0_10] : memref<16x32xf32, #tpu.memory_space<vmem>>, vector<16x32xf32>
      %c0_11 = arith.constant 0 : index
      %c0_12 = arith.constant 0 : index
      %c0_13 = arith.constant 0 : index
      %16 = vector.load %arg5[%c0_11, %c0_12, %c0_13] : memref<1x32x256xf32, #tpu.memory_space<vmem>>, vector<1x32x256xf32>
      %17 = vector.shape_cast %16 : vector<1x32x256xf32> to vector<32x256xf32>
      %cst_14 = arith.constant dense<0.000000e+00> : vector<16x256xf32>
      %18 = tpu.matmul %15, %17, %cst_14 {dimension_numbers = #tpu.dot_dimension_numbers<[1], [0], [0], [1], [0, 0, 1, 1], [], []>} : vector<16x32xf32>, vector<32x256xf32>, vector<16x256xf32> -> vector<16x256xf32>
      %19 = arith.addf %14, %18 : vector<16x256xf32>
      %20 = arith.index_cast %1 : i32 to index
      %c0_15 = arith.constant 0 : index
      %c0_16 = arith.constant 0 : index
      %21 = vector.load %arg9[%20, %c0_15, %c0_16] : memref<2x16x256xf32, #tpu.memory_space<vmem>>, vector<1x16x256xf32>
      %22 = vector.shape_cast %21 : vector<1x16x256xf32> to vector<16x256xf32>
      %23 = vector.shape_cast %19 : vector<16x256xf32> to vector<1x16x256xf32>
      tpu.vector_store %arg9[%20, %c0_15, %c0_16], %23 {strides = array<i32>} : memref<2x16x256xf32, #tpu.memory_space<vmem>>, vector<1x16x256xf32>,
      %c0_17 = arith.constant 0 : index
      %c0_18 = arith.constant 0 : index
      %24 = vector.load %arg10[%c0_17, %c0_18] : memref<16x1xf32, #tpu.memory_space<vmem>>, vector<16x1xf32>
      %cst_19 = arith.constant dense<0.000000e+00> : vector<16xf32>
      %25 = vector.multi_reduction <add>, %19, %cst_19 [1] : vector<16x256xf32> to vector<16xf32>
      %26 = vector.shape_cast %25 : vector<16xf32> to vector<16x1xf32>
      %27 = arith.addf %24, %26 : vector<16x1xf32>
      %c0_20 = arith.constant 0 : index
      %c0_21 = arith.constant 0 : index
      %28 = vector.load %arg10[%c0_20, %c0_21] : memref<16x1xf32, #tpu.memory_space<vmem>>, vector<16x1xf32>
      tpu.vector_store %arg10[%c0_20, %c0_21], %27 {strides = array<i32>} : memref<16x1xf32, #tpu.memory_space<vmem>>, vector<16x1xf32>,
      %c0_22 = arith.constant 0 : index
      %c0_23 = arith.constant 0 : index
      %29 = vector.load %arg11[%c0_22, %c0_23] : memref<16x1xf32, #tpu.memory_space<vmem>>, vector<16x1xf32>
      %30 = arith.mulf %19, %19 : vector<16x256xf32>
      %cst_24 = arith.constant dense<0.000000e+00> : vector<16xf32>
      %31 = vector.multi_reduction <add>, %30, %cst_24 [1] : vector<16x256xf32> to vector<16xf32>
      %32 = vector.shape_cast %31 : vector<16xf32> to vector<16x1xf32>
      %33 = arith.addf %29, %32 : vector<16x1xf32>
      %c0_25 = arith.constant 0 : index
      %c0_26 = arith.constant 0 : index
      %34 = vector.load %arg11[%c0_25, %c0_26] : memref<16x1xf32, #tpu.memory_space<vmem>>, vector<16x1xf32>
      tpu.vector_store %arg11[%c0_25, %c0_26], %33 {strides = array<i32>} : memref<16x1xf32, #tpu.memory_space<vmem>>, vector<16x1xf32>,
    } else {
    }
    %c1_i32_1 = arith.constant 1 : i32
    %5 = arith.cmpi eq, %arg0, %c1_i32_1 : i32
    %6 = arith.extui %5 : i1 to i32
    %c0_i32_2 = arith.constant 0 : i32
    %7 = arith.cmpi ne, %6, %c0_i32_2 : i32
    scf.if %7 {
      %c0_i32_3 = arith.constant 0 : i32
      %8 = arith.cmpi eq, %1, %c0_i32_3 : i32
      %9 = arith.extui %8 : i1 to i32
      %c0_i32_4 = arith.constant 0 : i32
      %10 = arith.cmpi ne, %9, %c0_i32_4 : i32
      scf.if %10 {
        %c0_13 = arith.constant 0 : index
        %c0_14 = arith.constant 0 : index
        %25 = vector.load %arg10[%c0_13, %c0_14] : memref<16x1xf32, #tpu.memory_space<vmem>>, vector<16x1xf32>
        %cst_15 = arith.constant 0.001953125 : f32
        %26 = vector.broadcast %cst_15 : f32 to vector<16x1xf32>
        %27 = arith.mulf %25, %26 : vector<16x1xf32>
        %c0_16 = arith.constant 0 : index
        %c0_17 = arith.constant 0 : index
        %28 = vector.load %arg11[%c0_16, %c0_17] : memref<16x1xf32, #tpu.memory_space<vmem>>, vector<16x1xf32>
        %cst_18 = arith.constant 0.001953125 : f32
        %29 = vector.broadcast %cst_18 : f32 to vector<16x1xf32>
        %30 = arith.mulf %28, %29 : vector<16x1xf32>
        %31 = arith.mulf %27, %27 : vector<16x1xf32>
        %32 = arith.subf %30, %31 : vector<16x1xf32>
        %cst_19 = arith.constant 0.000000e+00 : f32
        %33 = vector.broadcast %cst_19 : f32 to vector<16x1xf32>
        %34 = arith.maximumf %32, %33 : vector<16x1xf32>
        %cst_20 = arith.constant 9.99999974E-6 : f32
        %35 = vector.broadcast %cst_20 : f32 to vector<16x1xf32>
        %36 = arith.addf %34, %35 : vector<16x1xf32>
        %37 = math.rsqrt %36 : vector<16x1xf32>
        %c0_21 = arith.constant 0 : index
        %c0_22 = arith.constant 0 : index
        %38 = vector.load %arg3[%c0_21, %c0_22] : memref<16x2xf32, #tpu.memory_space<vmem>>, vector<16x1xf32>
        %c0_23 = arith.constant 0 : index
        %c1 = arith.constant 1 : index
        %39 = vector.load %arg3[%c0_23, %c1] : memref<16x2xf32, #tpu.memory_space<vmem>>, vector<16x1xf32>
        %40 = arith.mulf %38, %37 : vector<16x1xf32>
        %c0_24 = arith.constant 0 : index
        %c0_25 = arith.constant 0 : index
        %41 = vector.load %arg12[%c0_24, %c0_25] : memref<16x1xf32, #tpu.memory_space<vmem>>, vector<16x1xf32>
        tpu.vector_store %arg12[%c0_24, %c0_25], %40 {strides = array<i32>} : memref<16x1xf32, #tpu.memory_space<vmem>>, vector<16x1xf32>,
        %42 = arith.mulf %27, %38 : vector<16x1xf32>
        %43 = arith.mulf %42, %37 : vector<16x1xf32>
        %44 = arith.subf %39, %43 : vector<16x1xf32>
        %c0_26 = arith.constant 0 : index
        %c0_27 = arith.constant 0 : index
        %45 = vector.load %arg13[%c0_26, %c0_27] : memref<16x1xf32, #tpu.memory_space<vmem>>, vector<16x1xf32>
        tpu.vector_store %arg13[%c0_26, %c0_27], %44 {strides = array<i32>} : memref<16x1xf32, #tpu.memory_space<vmem>>, vector<16x1xf32>,
      } else {
      }
      %11 = arith.index_cast %1 : i32 to index
      %c0 = arith.constant 0 : index
      %c0_5 = arith.constant 0 : index
      %12 = vector.load %arg9[%11, %c0, %c0_5] : memref<2x16x256xf32, #tpu.memory_space<vmem>>, vector<1x16x256xf32>
      %13 = vector.shape_cast %12 : vector<1x16x256xf32> to vector<16x256xf32>
      %c0_6 = arith.constant 0 : index
      %c0_7 = arith.constant 0 : index
      %14 = vector.load %arg12[%c0_6, %c0_7] : memref<16x1xf32, #tpu.memory_space<vmem>>, vector<16x1xf32>
      %15 = vector.broadcast %14 : vector<16x1xf32> to vector<16x256xf32>
      %16 = arith.mulf %13, %15 : vector<16x256xf32>
      %c0_8 = arith.constant 0 : index
      %c0_9 = arith.constant 0 : index
      %17 = vector.load %arg13[%c0_8, %c0_9] : memref<16x1xf32, #tpu.memory_space<vmem>>, vector<16x1xf32>
      %18 = vector.broadcast %17 : vector<16x1xf32> to vector<16x256xf32>
      %19 = arith.addf %16, %18 : vector<16x256xf32>
      %cst = arith.constant 0.000000e+00 : f32
      %20 = vector.broadcast %cst : f32 to vector<16x256xf32>
      %21 = arith.maximumf %19, %20 : vector<16x256xf32>
      %c0_10 = arith.constant 0 : index
      %c0_11 = arith.constant 0 : index
      %c0_12 = arith.constant 0 : index
      %22 = vector.load %arg8[%c0_10, %c0_11, %c0_12] : memref<1x16x256xf32, #tpu.memory_space<vmem>>, vector<1x16x256xf32>
      %23 = vector.shape_cast %22 : vector<1x16x256xf32> to vector<16x256xf32>
      %24 = vector.shape_cast %21 : vector<16x256xf32> to vector<1x16x256xf32>
      tpu.vector_store %arg8[%c0_10, %c0_11, %c0_12], %24 {strides = array<i32>} : memref<1x16x256xf32, #tpu.memory_space<vmem>>, vector<1x16x256xf32>,
    } else {
    }
    return
  }
  func.func @transform_0(%arg0: i32, %arg1: i32, %arg2: i32) -> (i32, i32) {
    %c0_i32 = arith.constant 0 : i32
    %c0_i32_0 = arith.constant 0 : i32
    %c0_i32_1 = arith.constant 0 : i32
    return %c0_i32, %c0_i32_0 : i32, i32
  }
  func.func @transform_1(%arg0: i32, %arg1: i32, %arg2: i32) -> (i32, i32, i32) {
    %c1_i32 = arith.constant 1 : i32
    %0 = arith.subi %c1_i32, %arg0 : i32
    %1 = arith.muli %arg1, %0 : i32
    %c1_i32_0 = arith.constant 1 : i32
    %2 = arith.subi %c1_i32_0, %arg0 : i32
    %3 = arith.muli %arg2, %2 : i32
    %c0_i32 = arith.constant 0 : i32
    %c0_i32_1 = arith.constant 0 : i32
    return %1, %c0_i32, %3 : i32, i32, i32
  }
  func.func @transform_2(%arg0: i32, %arg1: i32, %arg2: i32) -> (i32, i32, i32) {
    %c1_i32 = arith.constant 1 : i32
    %0 = arith.subi %c1_i32, %arg0 : i32
    %1 = arith.muli %arg1, %0 : i32
    %c1_i32_0 = arith.constant 1 : i32
    %2 = arith.subi %c1_i32_0, %arg0 : i32
    %3 = arith.muli %arg2, %2 : i32
    %c0_i32 = arith.constant 0 : i32
    %c0_i32_1 = arith.constant 0 : i32
    return %1, %c0_i32, %3 : i32, i32, i32
  }
  func.func @transform_3(%arg0: i32, %arg1: i32, %arg2: i32) -> (i32, i32) {
    %c0_i32 = arith.constant 0 : i32
    %c0_i32_0 = arith.constant 0 : i32
    %c0_i32_1 = arith.constant 0 : i32
    return %c0_i32, %c0_i32_0 : i32, i32
  }
  func.func @transform_4(%arg0: i32, %arg1: i32, %arg2: i32) -> (i32, i32) {
    %c0_i32 = arith.constant 0 : i32
    %c0_i32_0 = arith.constant 0 : i32
    %c0_i32_1 = arith.constant 0 : i32
    return %c0_i32, %c0_i32_0 : i32, i32
  }
  func.func @transform_5(%arg0: i32, %arg1: i32, %arg2: i32) -> (i32, i32, i32) {
    %0 = arith.muli %arg1, %arg0 : i32
    %1 = arith.muli %arg2, %arg0 : i32
    %c0_i32 = arith.constant 0 : i32
    %c0_i32_0 = arith.constant 0 : i32
    return %0, %c0_i32, %1 : i32, i32, i32
  }
}

</mosaic_0001>

<bundles_post_ra>
// kernel: tpu_custom_call.1
= control target key start
LH: loop header
LB: loop body
LE: loop exit
PB: predicated region body
PF: predicated region fallthrough
CT: control target
= control target key end

     0   :  { %s1576_s0 = inlined_call_operand.vmem [shape: f32[16,2], index: 0, kind: input, shape index: {}]   ;;  %s1577_s1 = inlined_call_operand.hbm [shape: f32[2,16,256], index: 1, kind: input, shape index: {}]   ;;  %s1578_s2 = inlined_call_operand.hbm [shape: f32[2,32,256], index: 2, kind: input, shape index: {}]   ;;  %s1579_s3 = inlined_call_operand.vmem [shape: f32[16,16], index: 3, kind: input, shape index: {}]   ;;  %s1580_s4 = inlined_call_operand.vmem [shape: f32[16,32], index: 4, kind: input, shape index: {}]   ;;  %s1581_s5 = inlined_call_operand.hbm [shape: f32[2,16,256], index: 5, kind: output, shape index: {}]  }
   0x1   :  { %1590 = sst [smem:[#allocation22_spill]] %s1577_s1 }
   0x2   :  { %1591 = sst [smem:[#allocation23_spill]] %s1581_s5 }
   0x3   :  { %10 = vsyncpa [#allocation8], 0 }
   0x4   :  { %12 = vsyncpa [#allocation8 + $0x1], 0 }
   0x5   :  { %13 = vsyncpa [#allocation11], 0 }
   0x6   :  { %15 = vsyncpa [#allocation11 + $0x1], 0 }
   0x7   :  { %16 = vsyncpa [#allocation9], 0 }
   0x8   :  { %18 = vsyncpa [#allocation9 + $0x1], 0  ;;  %s1234_s18 = smov 0   ;;  %s1236_s19 = smov 0  }
   0x9   :  { %s1238_s20 = smov 0   ;;  %s1240_s21 = smov 0  }
   0xa   :  { %s1242_s22 = smov 0   ;;  %s1244_s23 = smov 0  }
   0xb   :  { %s1246_s24 = smov 0   ;;  %s1248_s25 = smov 0  }
   0xc   :  { %s1250_s26 = smov 0   ;;  %s1252_s27 = smov 0  }
   0xd   :  { %s1254_s28 = smov 0  }
   0xe LB: > { %1592 = sst [smem:[#allocation16_spill]] %s1170_s23  ;;  %s830_s29 = sadd.s32 4294967295, %s1190_s28   ;;  %s1190_s28 = sphi %s1254_s28, %s24_s28   ;;  %s1186_s27 = sphi %s1252_s27, %s1621_s27   ;;  %s1182_s26 = sphi %s1250_s26, %s1614_s26   ;;  %s1178_s25 = sphi %s1248_s25, %s1613_s25   ;;  %s1174_s24 = sphi %s1246_s24, %s1612_s24   ;;  %s1170_s23 = sphi %s1244_s23, %s1611_s23   ;;  %s1166_s22 = sphi %s1242_s22, %s1620_s22   ;;  %s1162_s21 = sphi %s1240_s21, %s1619_s21   ;;  %s1158_s20 = sphi %s1238_s20, %s1618_s20   ;;  %s1154_s19 = sphi %s1236_s19, %s1617_s19   ;;  %s1150_s18 = sphi %s1234_s18, %s1616_s18  }
   0xf   : > { %1593 = sst [smem:[#allocation17_spill]] %s1182_s26  ;;  %s39_s6 = sadd.s32 1, %s1182_s26 }
  0x10   : > { %1594 = sst [smem:[#allocation18_spill]] %s1186_s27  ;;  %s43_s7 = sadd.s32 1, %s1186_s27 }
  0x11   : > { %p41_p0 = scmp.ge.s32.totalorder %s39_s6, 2  ;;  %s68_s8 = ssub.s32 1, %s1186_s27 }
  0x12   : > { %s1293_s9 = smul.u32 %s1182_s26, %s68_s8  ;;  %s79_s10 = sadd.s32 1, %s1170_s23 }
  0x13   : > { %s1623_s6 = smov (%p41_p0, %s39_s6), 0  ;;  %s1625_s7 = smov (!%p41_p0, %s43_s7), %s1186_s27 }
  0x14   : > { %1595 = sst [smem:[#allocation19_spill]] %s1623_s6  ;;  %p86_p1 = scmp.ne.s32.totalorder %s1170_s23, %s1166_s22 }
  0x15   : > { %p87_p2 = scmp.eq.s32.totalorder %s1190_s28, 0  ;;  %p45_p3 = scmp.ge.s32.totalorder %s1625_s7, 2 }
  0x16   : > { %p92_p4 = scmp.ne.s32.totalorder %s1166_s22, %s1162_s21  ;;  %p93_p6 = scmp.eq.s32.totalorder %s830_s29, 0 }
  0x17   : > { %p1303_p5 = por %p87_p2, %p86_p1  ;;  %s1627_s7 = smov (%p45_p3, %s1625_s7), 0 }
  0x18   : > { %1597 = sst [smem:[#allocation20_spill]] %s1627_s7  ;;  %p1309_p7 = por %p93_p6, %p92_p4 }
  0x19   : > { %s178_s13 = smul.u32 %s1182_s26, %s1186_s27  ;;  %s71_s14 = ssub.s32 1, %s1627_s7 }
  0x1a   : > { %s1598_s12 = scalar_select %p1309_p7, 1, 0 }
  0x1b   : > { %s180_s15 = smul.u32 %s1627_s7, %s1623_s6  ;;  %s187_s17 = sadd.s32 1, %s1158_s20 }
  0x1c   : > { %s72_s16 = smul.u32 %s71_s14, %s1623_s6  ;;  %p197_p8 = scmp.ne.s32.totalorder %s1158_s20, %s1154_s19 }
  0x1d   : > { %s182_s21 = ssub.s32 %s178_s13, %s180_s15  ;;  %p198_p11 = scmp.eq.s32.totalorder %s830_s29, 3 }
  0x1e   : > { %s74_s8 = ssub.s32 %s1293_s9, %s72_s16  ;;  %p185_p9 = scmp.eq.s32.totalorder %s182_s21, 0 }
  0x1f   : > { %p77_p10 = scmp.eq.s32.totalorder %s74_s8, 0  ;;  %p1329_p12 = por %p198_p11, %p197_p8 }
  0x20   : > { %s1324_s30 = scalar_select %p185_p9, %s1158_s20, %s187_s17  }
  0x21   : > { %s1327_s5 = scalar_select %p77_p10, %s1170_s23, %s79_s10  }
  0x22   : > { %s1600_s27 = scalar_select %p1329_p12, 1, 0 }
  0x23   : > { %1599 = sst [smem:[#allocation21_spill]] %s1327_s5  ;;  %p203_p13 = scmp.ne.s32.totalorder %s1154_s19, %s1150_s18 }
  0x24   : > { %s1601_s7 = sadd.s32 4294967294, %s1190_s28   ;;  %p899_p1 = scmp.lt.s32.totalorder %s1190_s28, 4 }
  0x25   : > { %p204_p0 = scmp.eq.s32.totalorder %s1601_s7, 3  ;;  %s1339_s14 = sand.u32 1, %s1170_s23  }
  0x26   : > { %s834_s29 = sshll.u32 %s1339_s14, 5  ;;  %s861_s15 = sshll.u32 %s1293_s9, 9 }
  0x27   : > { %p1341_p2 = por %p204_p0, %p203_p13  ;;  %s1603_s1 = sld [smem:[#allocation22_spill]] }
  0x28   : > { %s237_s7 = scalar_lea.vmem [#allocation7], %s834_s29  ;;  %p1354_p3 = pnand %p899_p1, %p1303_p5 }
  0x29   : > { %s1602_s13 = scalar_select %p1341_p2, 1, 0 }
  0x2a   : > { %s249_s21 = sshll.u32 %s237_s7, 4  ;;  %s234_s6 = scalar_lea.sflag [#allocation8], %s1339_s14  ;;  %s1358_s21 = int_to_ptr.vmem [resolvable:$true] %s249_s21 }
  0x2b   : > { %p1006_p6 = pneg %p1354_p3 }
  0x2d   : > { %s1350_s17 = scalar_lea.hbm %s1603_s1, %s861_s15  ;;  %s1009_s11 = scalar_lea.hbm %s1603_s1, 1024 }
  0x2e   : > { %s1004_s26 = scalar_lea.hbm %s1350_s17, 512  ;;  %p1010_p5 = scmp.lt.u32.totalorder %s1350_s17, %s1603_s1 }
  0x2f   : > { %p1005_p4 = scmp.ne.s32.totalorder %s1350_s17, %s1004_s26  ;;  %p1011_p10 = scmp.lt.u32.totalorder %s1009_s11, %s1004_s26 }
  0x30   : > { %p1013_p13 = scmp.lt.u32.totalorder %s1004_s26, %s1350_s17 }
  0x31   : > { %p1007_p8 = pnand %p1006_p6, %p1005_p4  ;;  %p1012_p11 = por %p1011_p10, %p1010_p5 }
  0x33   : > { %p1008_p9 = pneg %p1007_p8  ;;  %p1014_p0 = por %p1013_p13, %p1012_p11 }
  0x35   : > { %p1015_p1 = pnand %p1014_p0, %p1008_p9 }
  0x37   : > { %1018 = shalt.err (!%p1015_p1)
}
  0x38   : > { %s1019_s7 = scalar_lea.vmem %s1358_s21, 512  ;;  %s1192_s29 = smov [#allocation7]  }
  0x39   : > { %p1020_p4 = scmp.ne.s32.totalorder %s1358_s21, %s1019_s7  ;;  %s1024_s15 = sshll.u32 %s1192_s29, 4  ;;  %s1025_s15 = int_to_ptr.vmem [resolvable:$false] %s1024_s15 }
  0x3a   : > { %s1026_s10 = scalar_lea.vmem %s1025_s15, 1024  ;;  %p1027_p12 = scmp.lt.s32.totalorder %s1358_s21, %s1025_s15 }
  0x3b   : > { %p1022_p8 = pnand %p1020_p4, %p1006_p6  ;;  %p1028_p5 = scmp.lt.s32.totalorder %s1026_s10, %s1019_s7 }
  0x3d   : > { %p1023_p2 = pneg %p1022_p8  ;;  %p1029_p10 = por %p1028_p5, %p1027_p12 }
  0x3f   : > { %p1030_p11 = pnand %p1029_p10, %p1023_p2 }
  0x41   : > { %1033 = shalt.err (!%p1030_p11)
}
  0x42   : > { %s1193_s26 = smov 256   ;;  %s1194_s11 = smov 16  }
  0x43   : > { %891 = dma.hbm_to_vmem [thread:$0]  (!%p1354_p3), %s1350_s17, 512, %s1358_s21, %s234_s6, %s1193_s26, %s1193_s26, %s1194_s11  }
  0x44   : > { %p840_p12 = scmp.ge.s32.totalorder %s1190_s28, 1  ;;  %p283_p2 = scmp.lt.s32.totalorder %s1190_s28, 5 }
  0x45   : > { %s837_s16 = sshll.u32 %s1339_s14, 6  ;;  %s862_s29 = sshll.u32 %s1293_s9, 10 }
  0x46   : > { %p1394_p9 = pnand %p840_p12, %p283_p2  ;;  %s263_s15 = scalar_lea.vmem [#allocation10], %s837_s16 }
  0x47   : > { %s275_s10 = sshll.u32 %s263_s15, 4  ;;  %s1402_s23 = scalar_lea.hbm %s1578_s2, %s862_s29  ;;  %s1404_s10 = int_to_ptr.vmem [resolvable:$true] %s275_s10 }
  0x48   : > { %s260_s6 = scalar_lea.sflag [#allocation11], %s1339_s14  ;;  %s1034_s17 = scalar_lea.hbm %s1402_s23, 1024 }
  0x49   : > { %p1035_p13 = scmp.ne.s32.totalorder %s1402_s23, %s1034_s17  ;;  %s1039_s16 = scalar_lea.hbm %s1578_s2, 2048 }
  0x4a   : > { %p1040_p4 = scmp.lt.u32.totalorder %s1402_s23, %s1578_s2  ;;  %p1041_p8 = scmp.lt.u32.totalorder %s1039_s16, %s1034_s17 }
  0x4b   : > { %p1037_p0 = pnand %p1035_p13, %p1006_p6  ;;  %p1043_p10 = scmp.lt.u32.totalorder %s1034_s17, %s1402_s23 }
  0x4c   : > { %p1042_p5 = por %p1041_p8, %p1040_p4 }
  0x4d   : > { %p1038_p1 = pneg %p1037_p0 }
  0x4e   : > { %p1044_p11 = por %p1043_p10, %p1042_p5 }
  0x50   : > { %p1045_p12 = pnand %p1044_p11, %p1038_p1 }
  0x52   : > { %1048 = shalt.err (!%p1045_p12)
}
  0x53   : > { %s1049_s29 = scalar_lea.vmem %s1404_s10, 1024  ;;  %s1195_s15 = smov [#allocation10]  }
  0x54   : > { %p1050_p2 = scmp.ne.s32.totalorder %s1404_s10, %s1049_s29  ;;  %s1054_s9 = sshll.u32 %s1195_s15, 4  ;;  %s1055_s9 = int_to_ptr.vmem [resolvable:$false] %s1054_s9 }
  0x55   : > { %s1056_s21 = scalar_lea.vmem %s1055_s9, 2048  ;;  %p1057_p7 = scmp.lt.s32.totalorder %s1404_s10, %s1055_s9 }
  0x56   : > { %p1052_p13 = pnand %p1050_p2, %p1006_p6  ;;  %p1058_p4 = scmp.lt.s32.totalorder %s1056_s21, %s1049_s29 }
  0x58   : > { %p1053_p0 = pneg %p1052_p13  ;;  %p1059_p8 = por %p1058_p4, %p1057_p7 }
  0x5a   : > { %p1060_p5 = pnand %p1059_p8, %p1053_p0 }
  0x5c   : > { %1063 = shalt.err (!%p1060_p5)
}
  0x5d   : > { %894 = dma.hbm_to_vmem [thread:$0]  (!%p1354_p3), %s1402_s23, 1024, %s1404_s10, %s260_s6, %s1193_s26, %s1193_s26, %s1194_s11  }
  0x5e   : > { %287 = sbr.rel (%p1394_p9) target bundleno = 939 (0x3ab), region = 40  ;;  %s289_s17 = sand.u32 (!%p1394_p9), 1, %s1166_s22  }
  0x5f   : > { %s841_s16 = sshll.u32 (!%p1394_p9), %s289_s17, 5  ;;  %s290_s1 = scalar_lea.sflag (!%p1394_p9), [#allocation8], %s289_s17 }
  0x60   : > { %s1438_s5 = scalar_lea.vmem (!%p1394_p9), [#allocation7], %s841_s16  ;;  %p1606_p7 = scmp.ne.s32.totalorder (!%p1394_p9), %s1598_s12, 0 }
  0x65   : > { %1137 = dma.done.wait (%p1606_p7), %s290_s1, 512  }
  0x66   : > { %1139 = vsyncadd (%p1606_p7), %s290_s1, 4294966784  ;;  %s842_s14 = sshll.u32 %s289_s17, 6  ;;  %s299_s8 = scalar_lea.sflag [#allocation11], %s289_s17 }
  0x67   : > { %s1444_s29 = scalar_lea.vmem [#allocation10], %s842_s14 }
  0x68   : > { %1141 = dma.done.wait (%p1606_p7), %s299_s8, 1024  }
  0x69   : > { %1143 = vsyncadd (%p1606_p7), %s299_s8, 4294966272  ;;  %s331_s23 = sand.u32 1, %s1154_s19   ;;  %p844_p3 = scmp.ne.s32.totalorder %s1178_s25, 0 }
  0x6a   : > { %s843_s26 = sshll.u32 %s331_s23, 5  ;;  %p845_p6 = scmp.ne.s32.totalorder (!%p844_p3), %s1174_s24, 0 }
  0x6b   : > { %s1453_s11 = scalar_lea.vmem [#allocation12], %s843_s26  ;;  %349 = sbr.rel (%p844_p3) target bundleno = 500 (0x1f4), region = 52 }
  0x72   : > { %353 = sbr.rel (%p845_p6) target bundleno = 121 (0x79), region = 56  ;;  %vm354_vm0 = vcmask (!%p845_p6), 7168   ;;  %v1196_v0 = vmov (!%p845_p6), 0.0  }
  0x73   : > { %355 = vst.msk [vmem:[#allocation3] sm:$0xff] (!%p845_p6), %vm354_vm0, %v1196_v0  ;;  %356 = vst.msk [vmem:[#allocation3 + $0x8] sm:$0xff] (!%p845_p6), %vm354_vm0, %v1196_v0 }
  0x74   : > { %357 = vst.msk [vmem:[#allocation4] sm:$0xff] (!%p845_p6), %vm354_vm0, %v1196_v0  ;;  %358 = vst.msk [vmem:[#allocation4 + $0x8] sm:$0xff] (!%p845_p6), %vm354_vm0, %v1196_v0 }
  0x75   : > { %359 = vst [vmem:[%s1453_s11] sm:$0xff] (!%p845_p6), %v1196_v0  ;;  %360 = vst [vmem:[%s1453_s11 + $0x8] sm:$0xff] (!%p845_p6), %v1196_v0 }
  0x76   : > { %361 = vst [vmem:[%s1453_s11 + $0x10] sm:$0xff] (!%p845_p6), %v1196_v0  ;;  %362 = vst [vmem:[%s1453_s11 + $0x18] sm:$0xff] (!%p845_p6), %v1196_v0 }
  0x79 PF: > { %v372_v1 = vld [vmem:[%s1444_s29 + $0x8] sm:$0xff]  ;;  %v374_v2 = vld [vmem:[%s1444_s29 + $0x18] sm:$0xff]  ;;  %v371_v3 = vld [vmem:[%s1444_s29] sm:$0xff]  ;;  %v1197_v8 = vmov 0.0   ;;  %vm463_vm1 = vcmask 130048   ;;  %vm379_vm2 = vcmask 261120  }
  0x7a   : > { %v866_v4 = vpack.c.bf16 %v374_v2, %v372_v1  ;;  %v373_v5 = vld [vmem:[%s1444_s29 + $0x10] sm:$0xff]  ;;  %v366_v6 = vld [vmem:[%s1438_s5 + $0x8] sm:$0xff]  ;;  %v368_v7 = vld [vmem:[%s1438_s5 + $0x18] sm:$0xff]  ;;  %534 = vmatprep.mubr.f32.mxu0 %v1197_v8  ;;  %450 = vmatprep.mubr.f32.mxu1 %v1197_v8  ;;  %s863_s16 = sshll.u32 %s1174_s24, 5  ;;  %vm564_vm3 = vcmask 7168  }
  0x7b   : > { %v868_v9 = vpack.c.bf16 %v373_v5, %v371_v3  ;;  %v874_v10 = vpack.c.bf16 %v368_v7, %v366_v6  ;;  %v376_v11 = vld [vmem:[%s1444_s29 + $0x28] sm:$0xff]  ;;  %v378_v12 = vld [vmem:[%s1444_s29 + $0x38] sm:$0xff]  ;;  %v365_v13 = vld [vmem:[%s1438_s5] sm:$0xff]  ;;  %s549_s1 = scalar_lea.vmem [#allocation2], %s863_s16 }
  0x7c   : > { %867 = vmatprep.subr.bf16.mxu1 %v866_v4  ;;  %v870_v14 = vpack.c.bf16 %v378_v12, %v376_v11  ;;  %v367_v15 = vld [vmem:[%s1438_s5 + $0x10] sm:$0xff]  ;;  %v375_v16 = vld [vmem:[%s1444_s29 + $0x20] sm:$0xff]  ;;  %v364_v22 = vld [vmem:[%s1579_s3 + $0x8] sm:$0xff] }
  0x7d   : > { %v377_v17 = vld [vmem:[%s1444_s29 + $0x30] sm:$0xff]  ;;  %869 = vmatpush1.bf16.msra.mxu1 %v868_v9  ;;  %875 = vmatprep.subr.bf16.mxu0 %v874_v10  ;;  %v876_v18 = vpack.c.bf16 %v367_v15, %v365_v13  ;;  %v363_v20 = vld [vmem:[%s1579_s3] sm:$0xff]  ;;  %v370_v23 = vld [vmem:[%s1580_s4 + $0x8] sm:$0xff] }
  0x7e   : > { %v872_v19 = vpack.c.bf16 %v377_v17, %v375_v16  ;;  %871 = vmatprep.subr.bf16.mxu1 %v870_v14  ;;  %v369_v21 = vld [vmem:[%s1580_s4] sm:$0xff]  ;;  %v567_v46 = vld [vmem:[#allocation4] sm:$0xff]  ;;  %v555_v49 = vld [vmem:[#allocation3 + $0x8] sm:$0xff] }
  0x7f   : > { %877 = vmatpush1.bf16.msra.mxu0 %v876_v18  ;;  %v554_v44 = vld [vmem:[#allocation3] sm:$0xff]  ;;  %v568_v52 = vld [vmem:[#allocation4 + $0x8] sm:$0xff] }
  0x81   : > { %873 = vmatpush1.bf16.msra.mxu1 %v872_v19 }
  0x82   : > { %848 = vmatmul.mubr.msk.f32.vlgmr.msra.gmra.mrb[0].mxu0 %vm463_vm1, %v363_v20 }
  0x83   : > { %540 = vmatprep.mubr.f32.mxu0 %v1197_v8 }
  0x84   : > { %846 = vmatmul.mubr.msk.f32.vlgmr.msra.gmra.mrb[0].mxu1 %vm379_vm2, %v369_v21 }
  0x85   : > { %456 = vmatprep.mubr.f32.mxu1 %v1197_v8 }
  0x86   : > { %849 = vmatmul.mubr.msk.f32.gmra.mrb[2].mxu0 %vm463_vm1, %v364_v22 }
  0x88   : > { %847 = vmatmul.mubr.msk.f32.gmra.mrb[2].mxu1 %vm379_vm2, %v370_v23 }
 0x155   : > { %v536_v24 = vpop.f32.mrb[0].mxu0 }
 0x156   : > { %v538_v25 = vpop.f32.mrb[1].mxu0 }
 0x157   : > { %v452_v26 = vpop.f32.mrb[0].mxu1 }
 0x158   : > { %v537_v27 = vadd.f32 %v536_v24, %v452_v26  ;;  %v454_v28 = vpop.f32.mrb[1].mxu1 }
 0x159   : > { %v539_v29 = vadd.f32 %v538_v25, %v454_v28  ;;  %v542_v30 = vpop.f32.mrb[2].mxu0 }
 0x15a   : > { %550 = vst [vmem:[%s549_s1] sm:$0xff] %v537_v27  ;;  %v544_v31 = vpop.f32.mrb[3].mxu0  ;;  %v569_v32 = vmul.f32 %v537_v27, %v537_v27 }
 0x15b   : > { %551 = vst [vmem:[%s549_s1 + $0x8] sm:$0xff] %v539_v29  ;;  %v458_v33 = vpop.f32.mrb[2].mxu1  ;;  %v556_v34 = vadd.f32 %v539_v29, %v537_v27  ;;  %v570_v35 = vmul.f32 %v539_v29, %v539_v29 }
 0x15c   : > { %v543_v36 = vadd.f32 %v542_v30, %v458_v33  ;;  %v460_v37 = vpop.f32.mrb[3].mxu1 }
 0x15d   : > { %v545_v38 = vadd.f32 %v544_v31, %v460_v37  ;;  %557 = vadd.xlane.f32.xlu0 %v556_v34  ;;  %v573_v39 = vadd.f32 %v570_v35, %v569_v32 }
 0x15e   : > { %552 = vst [vmem:[%s549_s1 + $0x10] sm:$0xff] %v543_v36  ;;  %v571_v40 = vmul.f32 %v543_v36, %v543_v36 }
 0x15f   : > { %553 = vst [vmem:[%s549_s1 + $0x18] sm:$0xff] %v545_v38  ;;  %574 = vadd.xlane.f32.xlu1 %v573_v39  ;;  %v559_v41 = vadd.f32 %v545_v38, %v543_v36  ;;  %v572_v42 = vmul.f32 %v545_v38, %v545_v38 }
 0x161   : > { %560 = vadd.xlane.f32.xlu0 %v559_v41  ;;  %v576_v43 = vadd.f32 %v572_v42, %v571_v40 }
 0x163   : > { %577 = vadd.xlane.f32.xlu1 %v576_v43 }
 0x1ea   : > { %v558_v45 = vpop.xlane.xlu0 %557 }
 0x1eb   : > { %v562_v47 = vadd.f32 %v558_v45, %v554_v44 }
 0x1ec   : > { %v575_v48 = vpop.xlane.xlu1 %574 }
 0x1ed   : > { %565 = vst.msk [vmem:[#allocation3] sm:$0xff] %vm564_vm3, %v562_v47  ;;  %v579_v50 = vadd.f32 %v575_v48, %v567_v46 }
 0x1ee   : > { %v561_v51 = vpop.xlane.xlu0 %560 }
 0x1ef   : > { %581 = vst.msk [vmem:[#allocation4] sm:$0xff] %vm564_vm3, %v579_v50  ;;  %v563_v53 = vadd.f32 %v561_v51, %v555_v49 }
 0x1f0   : > { %v578_v54 = vpop.xlane.xlu1 %577 }
 0x1f1   : > { %566 = vst.msk [vmem:[#allocation3 + $0x8] sm:$0xff] %vm564_vm3, %v563_v53  ;;  %v580_v55 = vadd.f32 %v578_v54, %v568_v52 }
 0x1f3   : > { %582 = vst.msk [vmem:[#allocation4 + $0x8] sm:$0xff] %vm564_vm3, %v580_v55 }
 0x1f4 PF: > { %p852_p9 = scmp.ne.s32.totalorder %s1178_s25, 1 }
 0x1f5   : > { %p853_p1 = scmp.ne.s32.totalorder (!%p852_p9), %s1174_s24, 0 }
 0x1f6   : > { %586 = sbr.rel (%p852_p9) target bundleno = 911 (0x38f), region = 60 }
 0x1fd   : > { %590 = sbr.rel (%p853_p1) target bundleno = 770 (0x302), region = 64  ;;  %v591_v56 = vld [vmem:[#allocation3] sm:$0xff] (!%p853_p1)  ;;  %v595_v57 = vld [vmem:[#allocation4] sm:$0xff] (!%p853_p1)  ;;  %v592_v60 = vld [vmem:[#allocation3 + $0x8] sm:$0xff] (!%p853_p1)  ;;  %vm613_vm4 = vcmask (!%p853_p1), 7168   ;;  %s1198_s26 = smov (!%p853_p1), 1  }
 0x1fe   : > { %v593_v58 = vmul.f32 (!%p853_p1), 0.001953125, %v591_v56  ;;  %v597_v59 = vmul.f32 (!%p853_p1), 0.001953125, %v595_v57  ;;  %v596_v61 = vld [vmem:[#allocation4 + $0x8] sm:$0xff] (!%p853_p1)  ;;  %v594_v62 = vmul.f32 (!%p853_p1), 0.001953125, %v592_v60  ;;  %v609_v8 = vld [vmem:[%s1576_s0] sm:$0xff] (!%p853_p1)  ;;  %v610_v9 = vld [vmem:[%s1576_s0 + $0x8] sm:$0xff] (!%p853_p1) }
 0x1ff   : > { %v598_v63 = vmul.f32 (!%p853_p1), 0.001953125, %v596_v61  ;;  %s1199_s12 = smov (!%p853_p1), 127  }
 0x200   : > { %v599_v0 = vmul.f32 (!%p853_p1), %v593_v58, %v593_v58  ;;  %v600_v1 = vmul.f32 (!%p853_p1), %v594_v62, %v594_v62  ;;  %v616_v10 = vmul.f32 (!%p853_p1), %v609_v8, %v593_v58  ;;  %v617_v11 = vmul.f32 (!%p853_p1), %v610_v9, %v594_v62 }
 0x202   : > { %v601_v2 = vsub.f32 (!%p853_p1), %v597_v59, %v599_v0  ;;  %v602_v3 = vsub.f32 (!%p853_p1), %v598_v63, %v600_v1 }
 0x204   : > { %v603_v4 = vmax.f32 %v601_v2, 0.0  ;;  %v604_v5 = vmax.f32 %v602_v3, 0.0 }
 0x206   : > { %v605_v6 = vadd.f32 1e-05, %v603_v4  ;;  %v606_v7 = vadd.f32 1e-05, %v604_v5 }
 0x208   : > { %998 = vrsqrt.f32 %v605_v6 }
 0x209   : > { %1000 = vrsqrt.f32 %v606_v7 }
 0x212   : > { %v999_v12 = vpop.eup %998 }
 0x213   : > { %v1001_v13 = vpop.eup %1000  ;;  %v618_v14 = vmul.f32 %v999_v12, %v616_v10  ;;  %v611_v15 = vmul.f32 %v999_v12, %v609_v8 }
 0x214   : > { %v612_v16 = vmul.f32 %v1001_v13, %v610_v9  ;;  %v619_v17 = vmul.f32 %v1001_v13, %v617_v11 }
 0x215   : > { %622 = vrot.lane.b32.xlu0 %v618_v14, %s1198_s26  ;;  %614 = vst.msk [vmem:[#allocation5] sm:$0xff] %vm613_vm4, %v611_v15 }
 0x216   : > { %615 = vst.msk [vmem:[#allocation5 + $0x8] sm:$0xff] %vm613_vm4, %v612_v16 }
 0x219   : > { %624 = vrot.lane.b32.xlu0 %v619_v17, %s1198_s26 }
 0x287   : > { %v623_v18 = vpop.permute.xlu0 %622 }
 0x288   : > { %v628_v19 = vsub.f32 %v609_v8, %v623_v18 }
 0x28a   : > { %632 = vrot.lane.b32.xlu1 %v628_v19, %s1199_s12 }
 0x28b   : > { %v625_v20 = vpop.permute.xlu0 %624 }
 0x28c   : > { %v629_v21 = vsub.f32 %v610_v9, %v625_v20 }
 0x28e   : > { %634 = vrot.lane.b32.xlu1 %v629_v21, %s1199_s12 }
 0x2fc   : > { %v633_v22 = vpop.permute.xlu1 %632 }
 0x2fd   : > { %638 = vst.msk [vmem:[#allocation6] sm:$0xff] %vm613_vm4, %v633_v22 }
 0x300   : > { %v635_v23 = vpop.permute.xlu1 %634 }
 0x301   : > { %639 = vst.msk [vmem:[#allocation6 + $0x8] sm:$0xff] %vm613_vm4, %v635_v23 }
 0x302 PF: > { %v647_v25 = vld [vmem:[#allocation5] sm:$0xff]  ;;  %v1200_v26 = vmov 0   ;;  %v648_v28 = vld [vmem:[#allocation5 + $0x8] sm:$0xff]  ;;  %s864_s7 = sshll.u32 %s1174_s24, 5 }
 0x303   : > { %1003 = vset.pattern.permute.xlu1 %v1200_v26  ;;  %1002 = vset.pattern.permute.xlu0 %v1200_v26  ;;  %s642_s10 = scalar_lea.vmem [#allocation2], %s864_s7 }
 0x304   : > { %v663_v24 = vld [vmem:[#allocation6] sm:$0xff]  ;;  %651 = vperm.xlu0 %1002, %v647_v25   ;;  %v643_v29 = vld [vmem:[%s642_s10] sm:$0xff]  ;;  %v644_v30 = vld [vmem:[%s642_s10 + $0x8] sm:$0xff] }
 0x305   : > { %667 = vperm.xlu1 %1003, %v663_v24   ;;  %v645_v35 = vld [vmem:[%s642_s10 + $0x10] sm:$0xff]  ;;  %v646_v36 = vld [vmem:[%s642_s10 + $0x18] sm:$0xff] }
 0x308   : > { %v664_v27 = vld [vmem:[#allocation6 + $0x8] sm:$0xff]  ;;  %656 = vperm.xlu0 %1002, %v648_v28  }
 0x309   : > { %672 = vperm.xlu1 %1003, %v664_v27  }
 0x383   : > { %v652_v32 = vpop.permute.xlu0 %651 }
 0x384   : > { %v668_v31 = vpop.permute.xlu1 %667  ;;  %v659_v33 = vmul.f32 %v652_v32, %v643_v29  ;;  %v660_v34 = vmul.f32 %v652_v32, %v644_v30 }
 0x386   : > { %v675_v37 = vadd.f32 %v668_v31, %v659_v33  ;;  %v676_v38 = vadd.f32 %v668_v31, %v660_v34 }
 0x387   : > { %v657_v39 = vpop.permute.xlu0 %656 }
 0x388   : > { %v679_v40 = vmax.f32 %v675_v37, 0.0  ;;  %v680_v41 = vmax.f32 %v676_v38, 0.0  ;;  %v661_v42 = vmul.f32 %v657_v39, %v645_v35  ;;  %v662_v43 = vmul.f32 %v657_v39, %v646_v36  ;;  %v673_v44 = vpop.permute.xlu1 %672 }
 0x38a   : > { %683 = vst [vmem:[%s1453_s11] sm:$0xff] %v679_v40  ;;  %684 = vst [vmem:[%s1453_s11 + $0x8] sm:$0xff] %v680_v41  ;;  %v677_v45 = vadd.f32 %v673_v44, %v661_v42  ;;  %v678_v46 = vadd.f32 %v673_v44, %v662_v43 }
 0x38c   : > { %v681_v47 = vmax.f32 %v677_v45, 0.0  ;;  %v682_v48 = vmax.f32 %v678_v46, 0.0 }
 0x38e   : > { %685 = vst [vmem:[%s1453_s11 + $0x10] sm:$0xff] %v681_v47  ;;  %686 = vst [vmem:[%s1453_s11 + $0x18] sm:$0xff] %v682_v48 }
 0x38f PF: > { %s695_s6 = smul.u32 %s1174_s24, %s1178_s25  ;;  %s705_s15 = sshll.u32 %s1453_s11, 4  ;;  %s1506_s15 = int_to_ptr.vmem [resolvable:$true] %s705_s15 }
 0x390   : > { %s1607_s16 = sld [smem:[#allocation23_spill]]  ;;  %s1515_s5 = scalar_lea.sflag [#allocation9], %s331_s23 }
 0x391   : > { %s865_s9 = sshll.u32 %s695_s6, 9  ;;  %s1064_s14 = scalar_lea.vmem %s1506_s15, 512 }
 0x392   : > { %p1065_p10 = scmp.ne.s32.totalorder %s1506_s15, %s1064_s14  ;;  %p1608_p11 = scmp.ne.s32.totalorder %s1600_s27, 0 }
 0x393   : > { %s1201_s24 = smov [#allocation12]  }
 0x394   : > { %p1066_p12 = pnand %p1065_p10, %p1608_p11  ;;  %s1068_s25 = sshll.u32 %s1201_s24, 4  ;;  %s1069_s25 = int_to_ptr.vmem [resolvable:$false] %s1068_s25 }
 0x395   : > { %s1070_s11 = scalar_lea.vmem %s1069_s25, 1024  ;;  %p1071_p13 = scmp.lt.s32.totalorder %s1506_s15, %s1069_s25 }
 0x396   : > { %s1511_s1 = scalar_lea.hbm %s1607_s16, %s865_s9  ;;  %p1067_p2 = pneg %p1066_p12 }
 0x397   : > { %p1072_p0 = scmp.lt.s32.totalorder %s1070_s11, %s1064_s14 }
 0x399   : > { %p1073_p4 = por %p1072_p0, %p1071_p13 }
 0x39b   : > { %p1074_p8 = pnand %p1073_p4, %p1067_p2 }
 0x39d   : > { %1077 = shalt.err (!%p1074_p8)
}
 0x39e   : > { %s1078_s23 = scalar_lea.hbm %s1511_s1, 512  ;;  %s1082_s26 = scalar_lea.hbm %s1607_s16, 1024 }
 0x39f   : > { %p1079_p5 = scmp.ne.s32.totalorder %s1511_s1, %s1078_s23  ;;  %p1083_p6 = scmp.lt.u32.totalorder %s1511_s1, %s1607_s16 }
 0x3a0   : > { %p1084_p9 = scmp.lt.u32.totalorder %s1082_s26, %s1078_s23  ;;  %p1086_p10 = scmp.lt.u32.totalorder %s1078_s23, %s1511_s1 }
 0x3a1   : > { %p1080_p7 = pnand %p1079_p5, %p1608_p11 }
 0x3a2   : > { %p1085_p1 = por %p1084_p9, %p1083_p6 }
 0x3a3   : > { %p1081_p3 = pneg %p1080_p7 }
 0x3a4   : > { %p1087_p12 = por %p1086_p10, %p1085_p1 }
 0x3a6   : > { %p1088_p2 = pnand %p1087_p12, %p1081_p3 }
 0x3a8   : > { %1091 = shalt.err (!%p1088_p2)
}
 0x3a9   : > { %s1202_s10 = smov 256   ;;  %s1203_s6 = smov 16  }
 0x3aa   : > { %886 = dma.vmem_to_hbm [thread:$0]  (%p1608_p11), %s1506_s15, 512, %s1511_s1, %s1515_s5, %s1202_s10, %s1202_s10, %s1203_s6  }
 0x3ab PF: > { %p900_p13 = scmp.ge.s32.totalorder %s1190_s28, 2  ;;  %s720_s9 = sand.u32 1, %s1150_s18  }
 0x3ac   : > { %p1609_p0 = scmp.ne.s32.totalorder %s1602_s13, 0  ;;  %s721_s21 = scalar_lea.sflag [#allocation9], %s720_s9 }
 0x3ae   : > { %p896_p4 = pnand %p900_p13, %p1609_p0 }
 0x3b0   : > { %1145 = dma.done.wait (!%p896_p4), %s721_s21, 512  }
 0x3b1   : > { %1147 = vsyncadd (!%p896_p4), %s721_s21, 4294966784  ;;  %s24_s28 = sadd.s32 1, %s1190_s28   ;;  %s1610_s27 = sld [smem:[#allocation16_spill]] }
 0x3b2   : > { %p21_p8 = scmp.ge.s32.totalorder %s24_s28, 6   ;;  %s1611_s23 = sld [smem:[#allocation21_spill]] }
 0x3b3   : > { %s1612_s24 = sld [smem:[#allocation17_spill]]  ;;  %s1613_s25 = sld [smem:[#allocation18_spill]] }
 0x3b4   : > { %s1614_s26 = sld [smem:[#allocation19_spill]]  ;;  %s1615_s15 = sld [smem:[#allocation20_spill]] }
 0x3b5   : > { %s1616_s18 = smov %s1154_s19  ;;  %s1617_s19 = smov %s1158_s20 }
 0x3b6   : > { %s1618_s20 = smov %s1324_s30  ;;  %s1619_s21 = smov %s1166_s22 }
 0x3b7   : > { %s1620_s22 = smov %s1610_s27  ;;  %23 = sbr.rel (!%p21_p8) target bundleno = 14 (0xe), region = 116 }
 0x3ba   : > { %s1621_s27 = smov %s1615_s15 }
 0x3be   :  { %726 = vsyncpa [#allocation8], 1 }
 0x3bf   :  { %728 = vsyncpa [#allocation8 + $0x1], 1 }
 0x3c0   :  { %729 = vsyncpa [#allocation11], 1 }
 0x3c1   :  { %731 = vsyncpa [#allocation11 + $0x1], 1 }
 0x3c2   :  { %732 = vsyncpa [#allocation9], 1 }
 0x3c3   :  { %734 = vsyncpa [#allocation9 + $0x1], 1 }

</bundles_post_ra>
